<compile_context>
chip_gen: v6e
topology: v6e:2x2x1
jax: 0.10.0
libtpu: 0.0.40
codegen_flags: <defaults>
</compile_context>

<pallas_src>
import jax
import jax.numpy as jnp
from jax.experimental import pallas as pl
from jax.experimental.pallas import tpu as pltpu


# Below this size the pallas_call launch + DMA overhead exceeds the copy cost.
_BYPASS_BYTES = 256 * 1024
# Number of concurrent HBM->HBM DMA chunks (lets several DMA engines work).
_NUM_DMA_CHUNKS = 8


def _chunk_rows(rows, n_chunks):
    """Split `rows` into <= n_chunks static (start, size) row ranges."""
    n = max(1, min(n_chunks, rows))
    base, rem = divmod(rows, n)
    chunks = []
    start = 0
    for i in range(n):
        size = base + (1 if i < rem else 0)
        if size > 0:
            chunks.append((start, size))
            start += size
    return chunks


def _make_dma_copy_kernel(chunks):
    """Kernel: chunked HBM->HBM DMA copy. `chunks` is a static list of (start, size)."""

    def kernel(x_hbm, o_hbm, sem):
        copies = []
        # Start all chunk DMAs first (overlap across DMA engines) ...
        for i, (start, size) in enumerate(chunks):
            cp = pltpu.make_async_copy(
                x_hbm.at[pl.ds(start, size), :],
                o_hbm.at[pl.ds(start, size), :],
                sem.at[i],
            )
            cp.start()
            copies.append(cp)
        # ... then wait for all of them.
        for cp in copies:
            cp.wait()

    return kernel


def _pallas_identity_copy(flat):
    """Materialize a copy of a 2D array via chunked HBM->HBM DMA (no VMEM staging)."""
    rows, _ = flat.shape
    chunks = _chunk_rows(rows, _NUM_DMA_CHUNKS)
    nbytes = flat.size * flat.dtype.itemsize

    return pl.pallas_call(
        _make_dma_copy_kernel(chunks),
        out_shape=jax.ShapeDtypeStruct(flat.shape, flat.dtype),
        in_specs=[pl.BlockSpec(memory_space=pl.ANY)],   # raw HBM ref, no auto-DMA
        out_specs=pl.BlockSpec(memory_space=pl.ANY),    # raw HBM ref, written via DMA
        scratch_shapes=[pltpu.SemaphoreType.DMA((len(chunks),))],
        cost_estimate=pl.CostEstimate(
            flops=0, transcendentals=0, bytes_accessed=2 * nbytes
        ),
    )(flat)


def identity_forward(feature, att_mask=None, head_mask=None, **kwargs):
    """Replicates Identity.forward: returns [feature].

    att_mask / head_mask are accepted and ignored, exactly like the PyTorch module.
    Small tensors bypass the kernel entirely (identity is free); larger tensors are
    copied with chunked HBM->HBM DMA when a fresh output buffer is materialized.
    """
    nbytes = int(feature.size) * feature.dtype.itemsize
    if nbytes <= _BYPASS_BYTES:
        # Cheapest possible identity: no kernel launch, no copy.
        return [feature]

    orig_shape = feature.shape
    if feature.ndim >= 2:
        lanes = int(orig_shape[-1])
        rows = int(feature.size) // lanes
    else:
        rows, lanes = 1, int(feature.size)

    flat = feature.reshape(rows, lanes)          # row-major, layout-only change
    out_flat = _pallas_identity_copy(flat)
    return [out_flat.reshape(orig_shape)]


if __name__ == "__main__":
    key = jax.random.PRNGKey(0)
    k1, k2 = jax.random.split(key, 2)

    # Case 1: upstream-sized activation (batch=2, seq=128, hidden=768 as produced by
    # the s3prl upstream) -> large enough to exercise the Pallas HBM->HBM DMA kernel.
    B, S, H = 2, 128, 768
    feature = jax.random.normal(k1, (B, S, H), dtype=jnp.float32)
    att_mask = jnp.ones((B, S), dtype=jnp.float32)    # ignored, like PyTorch
    head_mask = jnp.ones((B, S), dtype=jnp.float32)   # ignored, like PyTorch

    result = identity_forward(feature, att_mask, head_mask)
    out = jax.block_until_ready(result[0])

    assert isinstance(result, list) and len(result) == 1
    assert out.shape == feature.shape and out.dtype == feature.dtype
    assert jnp.array_equal(out, feature)

    # Case 2: tiny input (batch=2, seq=8, hidden=32) -> takes the no-copy bypass.
    b, s, h = 2, 8, 32
    small = jax.random.normal(k2, (b, s, h), dtype=jnp.float32)
    res2 = identity_forward(small, jnp.ones((b, s)), jnp.ones((b, s)))
    out2 = jax.block_until_ready(res2[0])
    assert isinstance(res2, list) and len(res2) == 1
    assert jnp.array_equal(out2, small)

    print("KERNEL_OK")
</pallas_src>

<mosaic_0001>
module attributes {stable_mosaic.version = 11 : i64} {
  func.func @kernel(%arg0: memref<256x768xf32, #tpu.memory_space<any>>, %arg1: memref<256x768xf32, #tpu.memory_space<any>>, %arg2: memref<8x!tpu.dma_semaphore, #tpu.memory_space<semaphore_mem>>) attributes {dimension_semantics = [], scalar_prefetch = 0 : i64, scratch_operands = 1 : i64, tpu.core_type = #tpu.core_type<tc>} {
    %c0_i32 = arith.constant 0 : i32
    %c0_i32_0 = arith.constant 0 : i32
    %c0_i32_1 = arith.constant 0 : i32
    %0 = tpu.memref_slice %arg0[%c0_i32_0, %c0_i32_1] : memref<256x768xf32, #tpu.memory_space<any>> -> memref<32x768xf32, #tpu.memory_space<any>>
    %c0_i32_2 = arith.constant 0 : i32
    %c0_i32_3 = arith.constant 0 : i32
    %1 = tpu.memref_slice %arg1[%c0_i32_2, %c0_i32_3] : memref<256x768xf32, #tpu.memory_space<any>> -> memref<32x768xf32, #tpu.memory_space<any>>
    %2 = tpu.memref_slice %arg2[%c0_i32] : memref<8x!tpu.dma_semaphore, #tpu.memory_space<semaphore_mem>> -> memref<1x!tpu.dma_semaphore, #tpu.memory_space<semaphore_mem>>
    %3 = tpu.memref_squeeze %2 : memref<1x!tpu.dma_semaphore, #tpu.memory_space<semaphore_mem>> -> memref<!tpu.dma_semaphore, #tpu.memory_space<semaphore_mem>>
    tpu.enqueue_dma source(%0 : memref<32x768xf32, #tpu.memory_space<any>>) target(%1 : memref<32x768xf32, #tpu.memory_space<any>>) target_semaphore(%3 : memref<!tpu.dma_semaphore, #tpu.memory_space<semaphore_mem>>)
    %c1_i32 = arith.constant 1 : i32
    %c32_i32 = arith.constant 32 : i32
    %c0_i32_4 = arith.constant 0 : i32
    %4 = tpu.memref_slice %arg0[%c32_i32, %c0_i32_4] : memref<256x768xf32, #tpu.memory_space<any>> -> memref<32x768xf32, #tpu.memory_space<any>>
    %c32_i32_5 = arith.constant 32 : i32
    %c0_i32_6 = arith.constant 0 : i32
    %5 = tpu.memref_slice %arg1[%c32_i32_5, %c0_i32_6] : memref<256x768xf32, #tpu.memory_space<any>> -> memref<32x768xf32, #tpu.memory_space<any>>
    %6 = tpu.memref_slice %arg2[%c1_i32] : memref<8x!tpu.dma_semaphore, #tpu.memory_space<semaphore_mem>> -> memref<1x!tpu.dma_semaphore, #tpu.memory_space<semaphore_mem>>
    %7 = tpu.memref_squeeze %6 : memref<1x!tpu.dma_semaphore, #tpu.memory_space<semaphore_mem>> -> memref<!tpu.dma_semaphore, #tpu.memory_space<semaphore_mem>>
    tpu.enqueue_dma source(%4 : memref<32x768xf32, #tpu.memory_space<any>>) target(%5 : memref<32x768xf32, #tpu.memory_space<any>>) target_semaphore(%7 : memref<!tpu.dma_semaphore, #tpu.memory_space<semaphore_mem>>)
    %c2_i32 = arith.constant 2 : i32
    %c64_i32 = arith.constant 64 : i32
    %c0_i32_7 = arith.constant 0 : i32
    %8 = tpu.memref_slice %arg0[%c64_i32, %c0_i32_7] : memref<256x768xf32, #tpu.memory_space<any>> -> memref<32x768xf32, #tpu.memory_space<any>>
    %c64_i32_8 = arith.constant 64 : i32
    %c0_i32_9 = arith.constant 0 : i32
    %9 = tpu.memref_slice %arg1[%c64_i32_8, %c0_i32_9] : memref<256x768xf32, #tpu.memory_space<any>> -> memref<32x768xf32, #tpu.memory_space<any>>
    %10 = tpu.memref_slice %arg2[%c2_i32] : memref<8x!tpu.dma_semaphore, #tpu.memory_space<semaphore_mem>> -> memref<1x!tpu.dma_semaphore, #tpu.memory_space<semaphore_mem>>
    %11 = tpu.memref_squeeze %10 : memref<1x!tpu.dma_semaphore, #tpu.memory_space<semaphore_mem>> -> memref<!tpu.dma_semaphore, #tpu.memory_space<semaphore_mem>>
    tpu.enqueue_dma source(%8 : memref<32x768xf32, #tpu.memory_space<any>>) target(%9 : memref<32x768xf32, #tpu.memory_space<any>>) target_semaphore(%11 : memref<!tpu.dma_semaphore, #tpu.memory_space<semaphore_mem>>)
    %c3_i32 = arith.constant 3 : i32
    %c96_i32 = arith.constant 96 : i32
    %c0_i32_10 = arith.constant 0 : i32
    %12 = tpu.memref_slice %arg0[%c96_i32, %c0_i32_10] : memref<256x768xf32, #tpu.memory_space<any>> -> memref<32x768xf32, #tpu.memory_space<any>>
    %c96_i32_11 = arith.constant 96 : i32
    %c0_i32_12 = arith.constant 0 : i32
    %13 = tpu.memref_slice %arg1[%c96_i32_11, %c0_i32_12] : memref<256x768xf32, #tpu.memory_space<any>> -> memref<32x768xf32, #tpu.memory_space<any>>
    %14 = tpu.memref_slice %arg2[%c3_i32] : memref<8x!tpu.dma_semaphore, #tpu.memory_space<semaphore_mem>> -> memref<1x!tpu.dma_semaphore, #tpu.memory_space<semaphore_mem>>
    %15 = tpu.memref_squeeze %14 : memref<1x!tpu.dma_semaphore, #tpu.memory_space<semaphore_mem>> -> memref<!tpu.dma_semaphore, #tpu.memory_space<semaphore_mem>>
    tpu.enqueue_dma source(%12 : memref<32x768xf32, #tpu.memory_space<any>>) target(%13 : memref<32x768xf32, #tpu.memory_space<any>>) target_semaphore(%15 : memref<!tpu.dma_semaphore, #tpu.memory_space<semaphore_mem>>)
    %c4_i32 = arith.constant 4 : i32
    %c128_i32 = arith.constant 128 : i32
    %c0_i32_13 = arith.constant 0 : i32
    %16 = tpu.memref_slice %arg0[%c128_i32, %c0_i32_13] : memref<256x768xf32, #tpu.memory_space<any>> -> memref<32x768xf32, #tpu.memory_space<any>>
    %c128_i32_14 = arith.constant 128 : i32
    %c0_i32_15 = arith.constant 0 : i32
    %17 = tpu.memref_slice %arg1[%c128_i32_14, %c0_i32_15] : memref<256x768xf32, #tpu.memory_space<any>> -> memref<32x768xf32, #tpu.memory_space<any>>
    %18 = tpu.memref_slice %arg2[%c4_i32] : memref<8x!tpu.dma_semaphore, #tpu.memory_space<semaphore_mem>> -> memref<1x!tpu.dma_semaphore, #tpu.memory_space<semaphore_mem>>
    %19 = tpu.memref_squeeze %18 : memref<1x!tpu.dma_semaphore, #tpu.memory_space<semaphore_mem>> -> memref<!tpu.dma_semaphore, #tpu.memory_space<semaphore_mem>>
    tpu.enqueue_dma source(%16 : memref<32x768xf32, #tpu.memory_space<any>>) target(%17 : memref<32x768xf32, #tpu.memory_space<any>>) target_semaphore(%19 : memref<!tpu.dma_semaphore, #tpu.memory_space<semaphore_mem>>)
    %c5_i32 = arith.constant 5 : i32
    %c160_i32 = arith.constant 160 : i32
    %c0_i32_16 = arith.constant 0 : i32
    %20 = tpu.memref_slice %arg0[%c160_i32, %c0_i32_16] : memref<256x768xf32, #tpu.memory_space<any>> -> memref<32x768xf32, #tpu.memory_space<any>>
    %c160_i32_17 = arith.constant 160 : i32
    %c0_i32_18 = arith.constant 0 : i32
    %21 = tpu.memref_slice %arg1[%c160_i32_17, %c0_i32_18] : memref<256x768xf32, #tpu.memory_space<any>> -> memref<32x768xf32, #tpu.memory_space<any>>
    %22 = tpu.memref_slice %arg2[%c5_i32] : memref<8x!tpu.dma_semaphore, #tpu.memory_space<semaphore_mem>> -> memref<1x!tpu.dma_semaphore, #tpu.memory_space<semaphore_mem>>
    %23 = tpu.memref_squeeze %22 : memref<1x!tpu.dma_semaphore, #tpu.memory_space<semaphore_mem>> -> memref<!tpu.dma_semaphore, #tpu.memory_space<semaphore_mem>>
    tpu.enqueue_dma source(%20 : memref<32x768xf32, #tpu.memory_space<any>>) target(%21 : memref<32x768xf32, #tpu.memory_space<any>>) target_semaphore(%23 : memref<!tpu.dma_semaphore, #tpu.memory_space<semaphore_mem>>)
    %c6_i32 = arith.constant 6 : i32
    %c192_i32 = arith.constant 192 : i32
    %c0_i32_19 = arith.constant 0 : i32
    %24 = tpu.memref_slice %arg0[%c192_i32, %c0_i32_19] : memref<256x768xf32, #tpu.memory_space<any>> -> memref<32x768xf32, #tpu.memory_space<any>>
    %c192_i32_20 = arith.constant 192 : i32
    %c0_i32_21 = arith.constant 0 : i32
    %25 = tpu.memref_slice %arg1[%c192_i32_20, %c0_i32_21] : memref<256x768xf32, #tpu.memory_space<any>> -> memref<32x768xf32, #tpu.memory_space<any>>
    %26 = tpu.memref_slice %arg2[%c6_i32] : memref<8x!tpu.dma_semaphore, #tpu.memory_space<semaphore_mem>> -> memref<1x!tpu.dma_semaphore, #tpu.memory_space<semaphore_mem>>
    %27 = tpu.memref_squeeze %26 : memref<1x!tpu.dma_semaphore, #tpu.memory_space<semaphore_mem>> -> memref<!tpu.dma_semaphore, #tpu.memory_space<semaphore_mem>>
    tpu.enqueue_dma source(%24 : memref<32x768xf32, #tpu.memory_space<any>>) target(%25 : memref<32x768xf32, #tpu.memory_space<any>>) target_semaphore(%27 : memref<!tpu.dma_semaphore, #tpu.memory_space<semaphore_mem>>)
    %c7_i32 = arith.constant 7 : i32
    %c224_i32 = arith.constant 224 : i32
    %c0_i32_22 = arith.constant 0 : i32
    %28 = tpu.memref_slice %arg0[%c224_i32, %c0_i32_22] : memref<256x768xf32, #tpu.memory_space<any>> -> memref<32x768xf32, #tpu.memory_space<any>>
    %c224_i32_23 = arith.constant 224 : i32
    %c0_i32_24 = arith.constant 0 : i32
    %29 = tpu.memref_slice %arg1[%c224_i32_23, %c0_i32_24] : memref<256x768xf32, #tpu.memory_space<any>> -> memref<32x768xf32, #tpu.memory_space<any>>
    %30 = tpu.memref_slice %arg2[%c7_i32] : memref<8x!tpu.dma_semaphore, #tpu.memory_space<semaphore_mem>> -> memref<1x!tpu.dma_semaphore, #tpu.memory_space<semaphore_mem>>
    %31 = tpu.memref_squeeze %30 : memref<1x!tpu.dma_semaphore, #tpu.memory_space<semaphore_mem>> -> memref<!tpu.dma_semaphore, #tpu.memory_space<semaphore_mem>>
    tpu.enqueue_dma source(%28 : memref<32x768xf32, #tpu.memory_space<any>>) target(%29 : memref<32x768xf32, #tpu.memory_space<any>>) target_semaphore(%31 : memref<!tpu.dma_semaphore, #tpu.memory_space<semaphore_mem>>)
    %c0_i32_25 = arith.constant 0 : i32
    %c0_i32_26 = arith.constant 0 : i32
    %c0_i32_27 = arith.constant 0 : i32
    %32 = tpu.memref_slice %arg0[%c0_i32_26, %c0_i32_27] : memref<256x768xf32, #tpu.memory_space<any>> -> memref<32x768xf32, #tpu.memory_space<any>>
    %c0_i32_28 = arith.constant 0 : i32
    %c0_i32_29 = arith.constant 0 : i32
    %33 = tpu.memref_slice %arg1[%c0_i32_28, %c0_i32_29] : memref<256x768xf32, #tpu.memory_space<any>> -> memref<32x768xf32, #tpu.memory_space<any>>
    %34 = tpu.memref_slice %arg2[%c0_i32_25] : memref<8x!tpu.dma_semaphore, #tpu.memory_space<semaphore_mem>> -> memref<1x!tpu.dma_semaphore, #tpu.memory_space<semaphore_mem>>
    %35 = tpu.memref_squeeze %34 : memref<1x!tpu.dma_semaphore, #tpu.memory_space<semaphore_mem>> -> memref<!tpu.dma_semaphore, #tpu.memory_space<semaphore_mem>>
    tpu.wait_dma2 semaphore(%35 : memref<!tpu.dma_semaphore, #tpu.memory_space<semaphore_mem>>) src(%32 : memref<32x768xf32, #tpu.memory_space<any>>) dst(%33 : memref<32x768xf32, #tpu.memory_space<any>>)
    %c1_i32_30 = arith.constant 1 : i32
    %c32_i32_31 = arith.constant 32 : i32
    %c0_i32_32 = arith.constant 0 : i32
    %36 = tpu.memref_slice %arg0[%c32_i32_31, %c0_i32_32] : memref<256x768xf32, #tpu.memory_space<any>> -> memref<32x768xf32, #tpu.memory_space<any>>
    %c32_i32_33 = arith.constant 32 : i32
    %c0_i32_34 = arith.constant 0 : i32
    %37 = tpu.memref_slice %arg1[%c32_i32_33, %c0_i32_34] : memref<256x768xf32, #tpu.memory_space<any>> -> memref<32x768xf32, #tpu.memory_space<any>>
    %38 = tpu.memref_slice %arg2[%c1_i32_30] : memref<8x!tpu.dma_semaphore, #tpu.memory_space<semaphore_mem>> -> memref<1x!tpu.dma_semaphore, #tpu.memory_space<semaphore_mem>>
    %39 = tpu.memref_squeeze %38 : memref<1x!tpu.dma_semaphore, #tpu.memory_space<semaphore_mem>> -> memref<!tpu.dma_semaphore, #tpu.memory_space<semaphore_mem>>
    tpu.wait_dma2 semaphore(%39 : memref<!tpu.dma_semaphore, #tpu.memory_space<semaphore_mem>>) src(%36 : memref<32x768xf32, #tpu.memory_space<any>>) dst(%37 : memref<32x768xf32, #tpu.memory_space<any>>)
    %c2_i32_35 = arith.constant 2 : i32
    %c64_i32_36 = arith.constant 64 : i32
    %c0_i32_37 = arith.constant 0 : i32
    %40 = tpu.memref_slice %arg0[%c64_i32_36, %c0_i32_37] : memref<256x768xf32, #tpu.memory_space<any>> -> memref<32x768xf32, #tpu.memory_space<any>>
    %c64_i32_38 = arith.constant 64 : i32
    %c0_i32_39 = arith.constant 0 : i32
    %41 = tpu.memref_slice %arg1[%c64_i32_38, %c0_i32_39] : memref<256x768xf32, #tpu.memory_space<any>> -> memref<32x768xf32, #tpu.memory_space<any>>
    %42 = tpu.memref_slice %arg2[%c2_i32_35] : memref<8x!tpu.dma_semaphore, #tpu.memory_space<semaphore_mem>> -> memref<1x!tpu.dma_semaphore, #tpu.memory_space<semaphore_mem>>
    %43 = tpu.memref_squeeze %42 : memref<1x!tpu.dma_semaphore, #tpu.memory_space<semaphore_mem>> -> memref<!tpu.dma_semaphore, #tpu.memory_space<semaphore_mem>>
    tpu.wait_dma2 semaphore(%43 : memref<!tpu.dma_semaphore, #tpu.memory_space<semaphore_mem>>) src(%40 : memref<32x768xf32, #tpu.memory_space<any>>) dst(%41 : memref<32x768xf32, #tpu.memory_space<any>>)
    %c3_i32_40 = arith.constant 3 : i32
    %c96_i32_41 = arith.constant 96 : i32
    %c0_i32_42 = arith.constant 0 : i32
    %44 = tpu.memref_slice %arg0[%c96_i32_41, %c0_i32_42] : memref<256x768xf32, #tpu.memory_space<any>> -> memref<32x768xf32, #tpu.memory_space<any>>
    %c96_i32_43 = arith.constant 96 : i32
    %c0_i32_44 = arith.constant 0 : i32
    %45 = tpu.memref_slice %arg1[%c96_i32_43, %c0_i32_44] : memref<256x768xf32, #tpu.memory_space<any>> -> memref<32x768xf32, #tpu.memory_space<any>>
    %46 = tpu.memref_slice %arg2[%c3_i32_40] : memref<8x!tpu.dma_semaphore, #tpu.memory_space<semaphore_mem>> -> memref<1x!tpu.dma_semaphore, #tpu.memory_space<semaphore_mem>>
    %47 = tpu.memref_squeeze %46 : memref<1x!tpu.dma_semaphore, #tpu.memory_space<semaphore_mem>> -> memref<!tpu.dma_semaphore, #tpu.memory_space<semaphore_mem>>
    tpu.wait_dma2 semaphore(%47 : memref<!tpu.dma_semaphore, #tpu.memory_space<semaphore_mem>>) src(%44 : memref<32x768xf32, #tpu.memory_space<any>>) dst(%45 : memref<32x768xf32, #tpu.memory_space<any>>)
    %c4_i32_45 = arith.constant 4 : i32
    %c128_i32_46 = arith.constant 128 : i32
    %c0_i32_47 = arith.constant 0 : i32
    %48 = tpu.memref_slice %arg0[%c128_i32_46, %c0_i32_47] : memref<256x768xf32, #tpu.memory_space<any>> -> memref<32x768xf32, #tpu.memory_space<any>>
    %c128_i32_48 = arith.constant 128 : i32
    %c0_i32_49 = arith.constant 0 : i32
    %49 = tpu.memref_slice %arg1[%c128_i32_48, %c0_i32_49] : memref<256x768xf32, #tpu.memory_space<any>> -> memref<32x768xf32, #tpu.memory_space<any>>
    %50 = tpu.memref_slice %arg2[%c4_i32_45] : memref<8x!tpu.dma_semaphore, #tpu.memory_space<semaphore_mem>> -> memref<1x!tpu.dma_semaphore, #tpu.memory_space<semaphore_mem>>
    %51 = tpu.memref_squeeze %50 : memref<1x!tpu.dma_semaphore, #tpu.memory_space<semaphore_mem>> -> memref<!tpu.dma_semaphore, #tpu.memory_space<semaphore_mem>>
    tpu.wait_dma2 semaphore(%51 : memref<!tpu.dma_semaphore, #tpu.memory_space<semaphore_mem>>) src(%48 : memref<32x768xf32, #tpu.memory_space<any>>) dst(%49 : memref<32x768xf32, #tpu.memory_space<any>>)
    %c5_i32_50 = arith.constant 5 : i32
    %c160_i32_51 = arith.constant 160 : i32
    %c0_i32_52 = arith.constant 0 : i32
    %52 = tpu.memref_slice %arg0[%c160_i32_51, %c0_i32_52] : memref<256x768xf32, #tpu.memory_space<any>> -> memref<32x768xf32, #tpu.memory_space<any>>
    %c160_i32_53 = arith.constant 160 : i32
    %c0_i32_54 = arith.constant 0 : i32
    %53 = tpu.memref_slice %arg1[%c160_i32_53, %c0_i32_54] : memref<256x768xf32, #tpu.memory_space<any>> -> memref<32x768xf32, #tpu.memory_space<any>>
    %54 = tpu.memref_slice %arg2[%c5_i32_50] : memref<8x!tpu.dma_semaphore, #tpu.memory_space<semaphore_mem>> -> memref<1x!tpu.dma_semaphore, #tpu.memory_space<semaphore_mem>>
    %55 = tpu.memref_squeeze %54 : memref<1x!tpu.dma_semaphore, #tpu.memory_space<semaphore_mem>> -> memref<!tpu.dma_semaphore, #tpu.memory_space<semaphore_mem>>
    tpu.wait_dma2 semaphore(%55 : memref<!tpu.dma_semaphore, #tpu.memory_space<semaphore_mem>>) src(%52 : memref<32x768xf32, #tpu.memory_space<any>>) dst(%53 : memref<32x768xf32, #tpu.memory_space<any>>)
    %c6_i32_55 = arith.constant 6 : i32
    %c192_i32_56 = arith.constant 192 : i32
    %c0_i32_57 = arith.constant 0 : i32
    %56 = tpu.memref_slice %arg0[%c192_i32_56, %c0_i32_57] : memref<256x768xf32, #tpu.memory_space<any>> -> memref<32x768xf32, #tpu.memory_space<any>>
    %c192_i32_58 = arith.constant 192 : i32
    %c0_i32_59 = arith.constant 0 : i32
    %57 = tpu.memref_slice %arg1[%c192_i32_58, %c0_i32_59] : memref<256x768xf32, #tpu.memory_space<any>> -> memref<32x768xf32, #tpu.memory_space<any>>
    %58 = tpu.memref_slice %arg2[%c6_i32_55] : memref<8x!tpu.dma_semaphore, #tpu.memory_space<semaphore_mem>> -> memref<1x!tpu.dma_semaphore, #tpu.memory_space<semaphore_mem>>
    %59 = tpu.memref_squeeze %58 : memref<1x!tpu.dma_semaphore, #tpu.memory_space<semaphore_mem>> -> memref<!tpu.dma_semaphore, #tpu.memory_space<semaphore_mem>>
    tpu.wait_dma2 semaphore(%59 : memref<!tpu.dma_semaphore, #tpu.memory_space<semaphore_mem>>) src(%56 : memref<32x768xf32, #tpu.memory_space<any>>) dst(%57 : memref<32x768xf32, #tpu.memory_space<any>>)
    %c7_i32_60 = arith.constant 7 : i32
    %c224_i32_61 = arith.constant 224 : i32
    %c0_i32_62 = arith.constant 0 : i32
    %60 = tpu.memref_slice %arg0[%c224_i32_61, %c0_i32_62] : memref<256x768xf32, #tpu.memory_space<any>> -> memref<32x768xf32, #tpu.memory_space<any>>
    %c224_i32_63 = arith.constant 224 : i32
    %c0_i32_64 = arith.constant 0 : i32
    %61 = tpu.memref_slice %arg1[%c224_i32_63, %c0_i32_64] : memref<256x768xf32, #tpu.memory_space<any>> -> memref<32x768xf32, #tpu.memory_space<any>>
    %62 = tpu.memref_slice %arg2[%c7_i32_60] : memref<8x!tpu.dma_semaphore, #tpu.memory_space<semaphore_mem>> -> memref<1x!tpu.dma_semaphore, #tpu.memory_space<semaphore_mem>>
    %63 = tpu.memref_squeeze %62 : memref<1x!tpu.dma_semaphore, #tpu.memory_space<semaphore_mem>> -> memref<!tpu.dma_semaphore, #tpu.memory_space<semaphore_mem>>
    tpu.wait_dma2 semaphore(%63 : memref<!tpu.dma_semaphore, #tpu.memory_space<semaphore_mem>>) src(%60 : memref<32x768xf32, #tpu.memory_space<any>>) dst(%61 : memref<32x768xf32, #tpu.memory_space<any>>)
    return
  }
}

</mosaic_0001>

<bundles_post_ra>
// kernel: tpu_custom_call.1
= control target key start
LH: loop header
LB: loop body
LE: loop exit
PB: predicated region body
PF: predicated region fallthrough
CT: control target
= control target key end

     0   :  { %s190_s9 = smov [#allocation2]   ;;  %s191_s10 = smov 131072   ;;  %s274_s0 = inlined_call_operand.hbm [shape: f32[256,768], index: 0, kind: input, shape index: {}]   ;;  %s275_s1 = inlined_call_operand.hbm [shape: f32[256,768], index: 1, kind: output, shape index: {}]  }
   0x1   :  { %s13_s8 = scalar_lea.hbm %s274_s0, 3072  ;;  %s192_s11 = smov 0  }
   0x2   :  { %12 = dma.general %s274_s0, 3072, %s275_s1, %s190_s9, %s191_s10, [#allocation4], %s192_s11, 0  }
   0x3   :  { %s14_s18 = scalar_lea.hbm %s275_s1, 3072  ;;  %s193_s19 = smov [#allocation2 + $0x1]  }
   0x4   :  { %22 = dma.general %s13_s8, 3072, %s14_s18, %s193_s19, %s191_s10, [#allocation6], %s192_s11, 0  }
   0x5   :  { %s23_s22 = scalar_lea.hbm %s274_s0, 6144  ;;  %s24_s25 = scalar_lea.hbm %s275_s1, 6144 }
   0x6   :  { %s33_s28 = scalar_lea.hbm %s274_s0, 9216  ;;  %s194_s29 = smov [#allocation2 + $0x2]  }
   0x7   :  { %32 = dma.general %s23_s22, 3072, %s24_s25, %s194_s29, %s191_s10, [#allocation8], %s192_s11, 0  }
   0x8   :  { %s34_s3 = scalar_lea.hbm %s275_s1, 9216  ;;  %s195_s4 = smov [#allocation2 + $0x3]  }
   0x9   :  { %42 = dma.general %s33_s28, 3072, %s34_s3, %s195_s4, %s191_s10, [#allocation10], %s192_s11, 0  }
   0xa   :  { %s43_s7 = scalar_lea.hbm %s274_s0, 12288  ;;  %s44_s12 = scalar_lea.hbm %s275_s1, 12288 }
   0xb   :  { %s53_s15 = scalar_lea.hbm %s274_s0, 15360  ;;  %s196_s16 = smov [#allocation2 + $0x4]  }
   0xc   :  { %52 = dma.general %s43_s7, 3072, %s44_s12, %s196_s16, %s191_s10, [#allocation12], %s192_s11, 0  }
   0xd   :  { %s54_s19 = scalar_lea.hbm %s275_s1, 15360  ;;  %s197_s20 = smov [#allocation2 + $0x5]  }
   0xe   :  { %62 = dma.general %s53_s15, 3072, %s54_s19, %s197_s20, %s191_s10, [#allocation14], %s192_s11, 0  }
   0xf   :  { %s63_s23 = scalar_lea.hbm %s274_s0, 18432  ;;  %s64_s26 = scalar_lea.hbm %s275_s1, 18432 }
  0x10   :  { %s73_s29 = scalar_lea.hbm %s274_s0, 21504  ;;  %s198_s30 = smov [#allocation2 + $0x6]  }
  0x11   :  { %72 = dma.general %s63_s23, 3072, %s64_s26, %s198_s30, %s191_s10, [#allocation16], %s192_s11, 0  }
  0x12   :  { %s74_s4 = scalar_lea.hbm %s275_s1, 21504  ;;  %s199_s5 = smov [#allocation2 + $0x7]  }
  0x13   :  { %82 = dma.general %s73_s29, 3072, %s74_s4, %s199_s5, %s191_s10, [#allocation18], %s192_s11, 0  }
  0x14   :  { %174 = dma.done.wait [#allocation2], 3072 }
  0x15   :  { %175 = vsyncadd [#allocation2], 4294964224 }
  0x16   :  { %176 = dma.done.wait [#allocation2 + $0x1], 3072 }
  0x17   :  { %177 = vsyncadd [#allocation2 + $0x1], 4294964224 }
  0x18   :  { %178 = dma.done.wait [#allocation2 + $0x2], 3072 }
  0x19   :  { %179 = vsyncadd [#allocation2 + $0x2], 4294964224 }
  0x1a   :  { %180 = dma.done.wait [#allocation2 + $0x3], 3072 }
  0x1b   :  { %181 = vsyncadd [#allocation2 + $0x3], 4294964224 }
  0x1c   :  { %182 = dma.done.wait [#allocation2 + $0x4], 3072 }
  0x1d   :  { %183 = vsyncadd [#allocation2 + $0x4], 4294964224 }
  0x1e   :  { %184 = dma.done.wait [#allocation2 + $0x5], 3072 }
  0x1f   :  { %185 = vsyncadd [#allocation2 + $0x5], 4294964224 }
  0x20   :  { %186 = dma.done.wait [#allocation2 + $0x6], 3072 }
  0x21   :  { %187 = vsyncadd [#allocation2 + $0x6], 4294964224 }
  0x22   :  { %188 = dma.done.wait [#allocation2 + $0x7], 3072 }
  0x23   :  { %189 = vsyncadd [#allocation2 + $0x7], 4294964224 }
  0x24   :  { %101 = vsyncmov [#allocation2] }
  0x27   :  { %s102_s0 = vpop.sfrf %101 }
  0x28   :  { %p156_p0 = scmp.ne.s32.totalorder %s102_s0, 0 }
  0x2a   :  { %106 = shalt.err (%p156_p0)  }
  0x2b   :  { %108 = vsyncmov [#allocation2 + $0x1] }
  0x2e   :  { %s109_s1 = vpop.sfrf %108 }
  0x2f   :  { %p157_p1 = scmp.ne.s32.totalorder %s109_s1, 0 }
  0x31   :  { %113 = shalt.err (%p157_p1)  }
  0x32   :  { %115 = vsyncmov [#allocation2 + $0x2] }
  0x35   :  { %s116_s10 = vpop.sfrf %115 }
  0x36   :  { %p158_p2 = scmp.ne.s32.totalorder %s116_s10, 0 }
  0x38   :  { %120 = shalt.err (%p158_p2)  }
  0x39   :  { %122 = vsyncmov [#allocation2 + $0x3] }
  0x3c   :  { %s123_s11 = vpop.sfrf %122 }
  0x3d   :  { %p159_p3 = scmp.ne.s32.totalorder %s123_s11, 0 }
  0x3f   :  { %127 = shalt.err (%p159_p3)  }
  0x40   :  { %129 = vsyncmov [#allocation2 + $0x4] }
  0x43   :  { %s130_s6 = vpop.sfrf %129 }
  0x44   :  { %p160_p4 = scmp.ne.s32.totalorder %s130_s6, 0 }
  0x46   :  { %134 = shalt.err (%p160_p4)  }
  0x47   :  { %136 = vsyncmov [#allocation2 + $0x5] }
  0x4a   :  { %s137_s7 = vpop.sfrf %136 }
  0x4b   :  { %p161_p5 = scmp.ne.s32.totalorder %s137_s7, 0 }
  0x4d   :  { %141 = shalt.err (%p161_p5)  }
  0x4e   :  { %143 = vsyncmov [#allocation2 + $0x6] }
  0x51   :  { %s144_s8 = vpop.sfrf %143 }
  0x52   :  { %p162_p6 = scmp.ne.s32.totalorder %s144_s8, 0 }
  0x54   :  { %148 = shalt.err (%p162_p6)  }
  0x55   :  { %150 = vsyncmov [#allocation2 + $0x7] }
  0x58   :  { %s151_s9 = vpop.sfrf %150 }
  0x59   :  { %p163_p7 = scmp.ne.s32.totalorder %s151_s9, 0 }
  0x5b   :  { %155 = shalt.err (%p163_p7)  }

</bundles_post_ra>
